<compile_context>
chip_gen: v7x
topology: tpu7x:2x2x1
jax: 0.10.0
libtpu: 0.0.40
codegen_flags: <defaults>
</compile_context>

<pallas_src>
import jax
import jax.numpy as jnp
from jax.experimental import pallas as pl
from jax.experimental.pallas import tpu as pltpu

EPS = 1e-5

# ---- fixed configuration implied by the forward's crop x[:, :2, :4, :4] ----
CH_IN = 2
CH_OUT = 6
CH_MID = (CH_IN + CH_OUT) // 2          # 4
CH_HALF = CH_MID // 2                   # 2
K_PATCH = CH_IN * 9                     # 18 (im2col contraction dim for 3x3 conv)
LANE = 128                              # lane-dense padded output channel width

# Row offsets inside the packed parameter slab (each block 8-row aligned).
R_WD = 0                                # rows  0..17 : conv_down weight (K_PATCH, CH_MID)
R_W12 = 24                              # rows 24..27 : fused conv1||conv2 weight (CH_MID, CH_MID)
R_WFC = 32                              # rows 32..35 : SE fc weight (CH_MID, CH_MID)
R_W3 = 40                               # rows 40..43 : conv3 weight (CH_MID, LANE) zero-padded
R_BIAS = 48                             # row 48: bd, 49: b12, 50: bfc, 51: b3 (lane-padded)
SLAB_ROWS = 56


def _hardsigmoid(x):
    # PyTorch F.hardsigmoid(x) = clamp(x/6 + 1/2, 0, 1)
    return jnp.clip(x * (1.0 / 6.0) + 0.5, 0.0, 1.0)


# --------------------------------- Pallas kernel ---------------------------------
def csp_res_stage2_kernel(patch_ref, prm_ref, out_ref):
    # One grid step == one batch image. patch_ref: (1, N, K_PATCH); out_ref: (1, N, LANE).
    x = patch_ref[0]                                        # (N, K_PATCH)

    # Static slices of the packed parameter slab (BN already folded into the weights).
    wd = prm_ref[R_WD:R_WD + K_PATCH, 0:CH_MID]             # (K_PATCH, CH_MID)
    bd = prm_ref[R_BIAS + 0:R_BIAS + 1, 0:CH_MID]           # (1, CH_MID)
    w12 = prm_ref[R_W12:R_W12 + CH_MID, 0:CH_MID]           # (CH_MID, CH_MID)  conv1||conv2
    b12 = prm_ref[R_BIAS + 1:R_BIAS + 2, 0:CH_MID]          # (1, CH_MID)
    wfc = prm_ref[R_WFC:R_WFC + CH_MID, 0:CH_MID]           # (CH_MID, CH_MID)
    bfc = prm_ref[R_BIAS + 2:R_BIAS + 3, 0:CH_MID]          # (1, CH_MID)
    w3 = prm_ref[R_W3:R_W3 + CH_MID, :]                     # (CH_MID, LANE) zero-padded cols
    b3 = prm_ref[R_BIAS + 3:R_BIAS + 4, :]                  # (1, LANE)

    # conv_down (3x3, s2, p1) as a single 2-D matmul over im2col patches; BN folded, ReLU.
    xm = jnp.maximum(jnp.dot(x, wd, preferred_element_type=jnp.float32) + bd, 0.0)

    # conv1 / conv2 fused into one matmul; blocks == identity (n=0); channel concat is implicit.
    y = jnp.maximum(jnp.dot(xm, w12, preferred_element_type=jnp.float32) + b12, 0.0)

    # EffectiveSE: spatial mean -> 1x1 fc (with bias) -> hardsigmoid -> per-channel scale.
    se = jnp.mean(y, axis=0, keepdims=True)                 # (1, CH_MID)
    # Tiny (1,4)x(4,4) dot: MXU has slack here (kernel is latency-bound); kept as a dot.
    se = jnp.dot(se, wfc, preferred_element_type=jnp.float32) + bfc
    se = _hardsigmoid(se)
    y = y * se                                              # broadcast over spatial rows

    # conv3 (1x1) + BN + ReLU; lane-dense (128-wide) unmasked store, zero-padded columns.
    out_ref[0] = jnp.maximum(jnp.dot(y, w3, preferred_element_type=jnp.float32) + b3, 0.0)


# --------------------------------- host-side glue ---------------------------------
def fold_bn(gamma, beta, mean, var):
    scale = gamma / jnp.sqrt(var + EPS)
    bias = beta - mean * scale
    return scale, bias


def im2col_3x3_s2_p1(x):
    """x: (B, Cin, H, W) -> patches (B, Ho*Wo, Cin*9), inner ordering (ci, kh, kw)."""
    B, Cin, H, W = x.shape
    Ho = (H + 2 - 3) // 2 + 1
    Wo = (W + 2 - 3) // 2 + 1
    xp = jnp.pad(x, ((0, 0), (0, 0), (1, 1), (1, 1)))
    pats = []
    for oh in range(Ho):
        for ow in range(Wo):
            pats.append(xp[:, :, oh * 2:oh * 2 + 3, ow * 2:ow * 2 + 3].reshape(B, -1))
    return jnp.stack(pats, axis=1), Ho, Wo


def csp_res_stage2_pallas(x, param_slab):
    """x: NCHW input (B, C>=2, H>=4, W>=4). Returns NCHW output (B, CH_OUT, Ho, Wo)."""
    # Glue: crop exactly like the PyTorch forward: x[:, :2, :4, :4]
    xc = x[:, :CH_IN, :4, :4].astype(jnp.float32)
    B = xc.shape[0]

    patches, Ho, Wo = im2col_3x3_s2_p1(xc)                  # (B, N, 18)
    N = Ho * Wo

    out = pl.pallas_call(
        csp_res_stage2_kernel,
        out_shape=jax.ShapeDtypeStruct((B, N, LANE), jnp.float32),
        grid=(B,),
        in_specs=[
            pl.BlockSpec((1, N, K_PATCH), lambda b: (b, 0, 0)),
            pl.BlockSpec((SLAB_ROWS, LANE), lambda b: (0, 0)),   # resident across grid
        ],
        out_specs=pl.BlockSpec((1, N, LANE), lambda b: (b, 0, 0)),
        compiler_params=pltpu.CompilerParams(
            dimension_semantics=("parallel",)),
    )(patches, param_slab)

    # Glue: crop padded lanes, (B, N, Cout) -> NCHW
    out = out[:, :, :CH_OUT]
    return out.reshape(B, Ho, Wo, CH_OUT).transpose(0, 3, 1, 2)


# ----------------------- pure-JAX reference (NCHW, mirrors PyTorch) -----------------------
def _conv_bn_relu_ref(x, w, gamma, beta, mean, var, stride, pad):
    y = jax.lax.conv_general_dilated(
        x, w, (stride, stride), [(pad, pad), (pad, pad)],
        dimension_numbers=("NCHW", "OIHW", "NCHW"))
    y = (y - mean[None, :, None, None]) / jnp.sqrt(var[None, :, None, None] + EPS)
    y = y * gamma[None, :, None, None] + beta[None, :, None, None]
    return jnp.maximum(y, 0.0)


def csp_res_stage2_ref(x, raw):
    xc = x[:, :CH_IN, :4, :4].astype(jnp.float32)
    (wd, bnd, w1, bn1, w2, bn2, wfc, bfc, w3, bn3) = raw
    xm = _conv_bn_relu_ref(xc, wd, *bnd, stride=2, pad=1)
    y1 = _conv_bn_relu_ref(xm, w1, *bn1, stride=1, pad=0)
    y2 = _conv_bn_relu_ref(xm, w2, *bn2, stride=1, pad=0)   # blocks == identity
    y = jnp.concatenate([y1, y2], axis=1)
    x_se = y.mean((2, 3), keepdims=True)
    x_se = jax.lax.conv_general_dilated(
        x_se, wfc, (1, 1), [(0, 0), (0, 0)],
        dimension_numbers=("NCHW", "OIHW", "NCHW")) + bfc[None, :, None, None]
    y = y * _hardsigmoid(x_se)
    return _conv_bn_relu_ref(y, w3, *bn3, stride=1, pad=0)


# ----------------------- deterministic parameter construction -----------------------
def make_params(key):
    ks = jax.random.split(key, 10)

    def conv_w(k, co, ci, kh, kw):
        return jax.random.normal(k, (co, ci, kh, kw), jnp.float32) * 0.1

    def bn(k, c):
        k1, k2, k3, k4 = jax.random.split(k, 4)
        gamma = 1.0 + 0.1 * jax.random.normal(k1, (c,), jnp.float32)
        beta = 0.1 * jax.random.normal(k2, (c,), jnp.float32)
        mean = 0.1 * jax.random.normal(k3, (c,), jnp.float32)
        var = jax.random.uniform(k4, (c,), jnp.float32, 0.5, 1.5)
        return gamma, beta, mean, var

    wd = conv_w(ks[0], CH_MID, CH_IN, 3, 3)
    bnd = bn(ks[1], CH_MID)
    w1 = conv_w(ks[2], CH_HALF, CH_MID, 1, 1)
    bn1 = bn(ks[3], CH_HALF)
    w2 = conv_w(ks[4], CH_HALF, CH_MID, 1, 1)
    bn2 = bn(ks[5], CH_HALF)
    wfc = conv_w(ks[6], CH_MID, CH_MID, 1, 1)
    bfc = 0.1 * jax.random.normal(ks[7], (CH_MID,), jnp.float32)
    w3 = conv_w(ks[8], CH_OUT, CH_MID, 1, 1)
    bn3 = bn(ks[9], CH_OUT)

    raw = (wd, bnd, w1, bn1, w2, bn2, wfc, bfc, w3, bn3)

    # --- fold BN scales directly into the weight matrices (bias-only epilogues) ---
    sd, bd = fold_bn(*bnd)
    s1, b1 = fold_bn(*bn1)
    s2, b2 = fold_bn(*bn2)
    s3, b3 = fold_bn(*bn3)

    wd_m = wd.reshape(CH_MID, -1).T * sd[None, :]            # (Cin*9, Cmid), (ci,kh,kw) rows
    w1_m = w1.reshape(CH_HALF, CH_MID).T * s1[None, :]       # (Cmid, Cmid//2)
    w2_m = w2.reshape(CH_HALF, CH_MID).T * s2[None, :]
    w12_m = jnp.concatenate([w1_m, w2_m], axis=1)            # fused conv1||conv2 (Cmid, Cmid)
    b12 = jnp.concatenate([b1, b2])
    wfc_m = wfc.reshape(CH_MID, CH_MID).T                    # (Cmid, Cmid)
    w3_m = w3.reshape(CH_OUT, CH_MID).T * s3[None, :]        # (Cmid, Cout)

    # --- pack everything into one lane-dense (SLAB_ROWS, 128) VMEM slab ---
    slab = jnp.zeros((SLAB_ROWS, LANE), jnp.float32)
    slab = slab.at[R_WD:R_WD + K_PATCH, :CH_MID].set(wd_m)
    slab = slab.at[R_W12:R_W12 + CH_MID, :CH_MID].set(w12_m)
    slab = slab.at[R_WFC:R_WFC + CH_MID, :CH_MID].set(wfc_m)
    slab = slab.at[R_W3:R_W3 + CH_MID, :CH_OUT].set(w3_m)    # cols >= CH_OUT stay zero
    slab = slab.at[R_BIAS + 0, :CH_MID].set(bd)
    slab = slab.at[R_BIAS + 1, :CH_MID].set(b12)
    slab = slab.at[R_BIAS + 2, :CH_MID].set(bfc)
    slab = slab.at[R_BIAS + 3, :CH_OUT].set(b3)              # padded lanes -> relu(0) = 0

    return slab, raw


if __name__ == "__main__":
    key = jax.random.PRNGKey(0)
    kx, kp = jax.random.split(key)

    x = jax.random.normal(kx, (2, 4, 16, 16), jnp.float32)   # NCHW input
    param_slab, raw_params = make_params(kp)

    out = csp_res_stage2_pallas(x, param_slab)
    out = jax.block_until_ready(out)

    ref = csp_res_stage2_ref(x, raw_params)
    assert out.shape == ref.shape == (2, 6, 2, 2), (out.shape, ref.shape)
    assert jnp.allclose(out, ref, atol=1e-3, rtol=1e-3), \
        f"max abs diff = {jnp.max(jnp.abs(out - ref))}"

    print("KERNEL_OK")
</pallas_src>

<mosaic_0001>
module attributes {stable_mosaic.version = 11 : i64} {
  func.func @csp_res_stage2_kernel(%arg0: i32, %arg1: memref<1x4x18xf32, #tpu.memory_space<vmem>>, %arg2: memref<56x128xf32, #tpu.memory_space<vmem>>, %arg3: memref<1x4x128xf32, #tpu.memory_space<vmem>>) attributes {dimension_semantics = [#tpu.dimension_semantics<parallel>], iteration_bounds = array<i64: 2>, scalar_prefetch = 0 : i64, scratch_operands = 0 : i64, tpu.core_type = #tpu.core_type<tc>, window_params = [{transform_indices = @transform_0, window_bounds = array<i64: 1, 4, 18>}, {pipeline_mode = #tpu.pipeline_mode<synchronous>, transform_indices = @transform_1, window_bounds = array<i64: 56, 128>}, {transform_indices = @transform_2, window_bounds = array<i64: 1, 4, 128>}]} {
    %c0 = arith.constant 0 : index
    %c0_0 = arith.constant 0 : index
    %c0_1 = arith.constant 0 : index
    %0 = vector.load %arg1[%c0, %c0_0, %c0_1] : memref<1x4x18xf32, #tpu.memory_space<vmem>>, vector<1x4x18xf32>
    %1 = vector.shape_cast %0 : vector<1x4x18xf32> to vector<4x18xf32>
    %c0_2 = arith.constant 0 : index
    %c0_3 = arith.constant 0 : index
    %2 = vector.load %arg2[%c0_2, %c0_3] : memref<56x128xf32, #tpu.memory_space<vmem>>, vector<18x4xf32>
    %c48 = arith.constant 48 : index
    %c0_4 = arith.constant 0 : index
    %3 = vector.load %arg2[%c48, %c0_4] : memref<56x128xf32, #tpu.memory_space<vmem>>, vector<1x4xf32>
    %c24 = arith.constant 24 : index
    %c0_5 = arith.constant 0 : index
    %4 = vector.load %arg2[%c24, %c0_5] : memref<56x128xf32, #tpu.memory_space<vmem>>, vector<4x4xf32>
    %c49 = arith.constant 49 : index
    %c0_6 = arith.constant 0 : index
    %5 = vector.load %arg2[%c49, %c0_6] : memref<56x128xf32, #tpu.memory_space<vmem>>, vector<1x4xf32>
    %c32 = arith.constant 32 : index
    %c0_7 = arith.constant 0 : index
    %6 = vector.load %arg2[%c32, %c0_7] : memref<56x128xf32, #tpu.memory_space<vmem>>, vector<4x4xf32>
    %c50 = arith.constant 50 : index
    %c0_8 = arith.constant 0 : index
    %7 = vector.load %arg2[%c50, %c0_8] : memref<56x128xf32, #tpu.memory_space<vmem>>, vector<1x4xf32>
    %c40 = arith.constant 40 : index
    %c0_9 = arith.constant 0 : index
    %8 = vector.load %arg2[%c40, %c0_9] : memref<56x128xf32, #tpu.memory_space<vmem>>, vector<4x128xf32>
    %c51 = arith.constant 51 : index
    %c0_10 = arith.constant 0 : index
    %9 = vector.load %arg2[%c51, %c0_10] : memref<56x128xf32, #tpu.memory_space<vmem>>, vector<1x128xf32>
    %cst = arith.constant dense<0.000000e+00> : vector<4x4xf32>
    %10 = tpu.matmul %1, %2, %cst {dimension_numbers = #tpu.dot_dimension_numbers<[1], [0], [0], [1], [0, 0, 1, 1], [], []>} : vector<4x18xf32>, vector<18x4xf32>, vector<4x4xf32> -> vector<4x4xf32>
    %11 = vector.broadcast %3 : vector<1x4xf32> to vector<4x4xf32>
    %12 = arith.addf %10, %11 : vector<4x4xf32>
    %cst_11 = arith.constant 0.000000e+00 : f32
    %13 = vector.broadcast %cst_11 : f32 to vector<4x4xf32>
    %14 = arith.maximumf %12, %13 : vector<4x4xf32>
    %cst_12 = arith.constant dense<0.000000e+00> : vector<4x4xf32>
    %15 = tpu.matmul %14, %4, %cst_12 {dimension_numbers = #tpu.dot_dimension_numbers<[1], [0], [0], [1], [0, 0, 1, 1], [], []>} : vector<4x4xf32>, vector<4x4xf32>, vector<4x4xf32> -> vector<4x4xf32>
    %16 = vector.broadcast %5 : vector<1x4xf32> to vector<4x4xf32>
    %17 = arith.addf %15, %16 : vector<4x4xf32>
    %cst_13 = arith.constant 0.000000e+00 : f32
    %18 = vector.broadcast %cst_13 : f32 to vector<4x4xf32>
    %19 = arith.maximumf %17, %18 : vector<4x4xf32>
    %cst_14 = arith.constant dense<0.000000e+00> : vector<4xf32>
    %20 = vector.multi_reduction <add>, %19, %cst_14 [0] : vector<4x4xf32> to vector<4xf32>
    %21 = vector.shape_cast %20 : vector<4xf32> to vector<1x4xf32>
    %cst_15 = arith.constant 4.000000e+00 : f32
    %22 = vector.broadcast %cst_15 : f32 to vector<1x4xf32>
    %23 = arith.divf %21, %22 : vector<1x4xf32>
    %cst_16 = arith.constant dense<0.000000e+00> : vector<1x4xf32>
    %24 = tpu.matmul %23, %6, %cst_16 {dimension_numbers = #tpu.dot_dimension_numbers<[1], [0], [0], [1], [0, 0, 1, 1], [], []>} : vector<1x4xf32>, vector<4x4xf32>, vector<1x4xf32> -> vector<1x4xf32>
    %25 = arith.addf %24, %7 : vector<1x4xf32>
    %cst_17 = arith.constant 0.166666672 : f32
    %26 = vector.broadcast %cst_17 : f32 to vector<1x4xf32>
    %27 = arith.mulf %25, %26 : vector<1x4xf32>
    %cst_18 = arith.constant 5.000000e-01 : f32
    %28 = vector.broadcast %cst_18 : f32 to vector<1x4xf32>
    %29 = arith.addf %27, %28 : vector<1x4xf32>
    %cst_19 = arith.constant 0.000000e+00 : f32
    %cst_20 = arith.constant 1.000000e+00 : f32
    %30 = vector.broadcast %cst_19 : f32 to vector<1x4xf32>
    %31 = arith.maximumf %30, %29 : vector<1x4xf32>
    %32 = vector.broadcast %cst_20 : f32 to vector<1x4xf32>
    %33 = arith.minimumf %32, %31 : vector<1x4xf32>
    %34 = vector.broadcast %33 : vector<1x4xf32> to vector<4x4xf32>
    %35 = arith.mulf %19, %34 : vector<4x4xf32>
    %cst_21 = arith.constant dense<0.000000e+00> : vector<4x128xf32>
    %36 = tpu.matmul %35, %8, %cst_21 {dimension_numbers = #tpu.dot_dimension_numbers<[1], [0], [0], [1], [0, 0, 1, 1], [], []>} : vector<4x4xf32>, vector<4x128xf32>, vector<4x128xf32> -> vector<4x128xf32>
    %37 = vector.broadcast %9 : vector<1x128xf32> to vector<4x128xf32>
    %38 = arith.addf %36, %37 : vector<4x128xf32>
    %cst_22 = arith.constant 0.000000e+00 : f32
    %39 = vector.broadcast %cst_22 : f32 to vector<4x128xf32>
    %40 = arith.maximumf %38, %39 : vector<4x128xf32>
    %c0_23 = arith.constant 0 : index
    %c0_24 = arith.constant 0 : index
    %c0_25 = arith.constant 0 : index
    %41 = vector.load %arg3[%c0_23, %c0_24, %c0_25] : memref<1x4x128xf32, #tpu.memory_space<vmem>>, vector<1x4x128xf32>
    %42 = vector.shape_cast %41 : vector<1x4x128xf32> to vector<4x128xf32>
    %43 = vector.shape_cast %40 : vector<4x128xf32> to vector<1x4x128xf32>
    tpu.vector_store %arg3[%c0_23, %c0_24, %c0_25], %43 {strides = array<i32>} : memref<1x4x128xf32, #tpu.memory_space<vmem>>, vector<1x4x128xf32>,
    return
  }
  func.func @transform_0(%arg0: i32) -> (i32, i32, i32) {
    %c0_i32 = arith.constant 0 : i32
    %c0_i32_0 = arith.constant 0 : i32
    %c0_i32_1 = arith.constant 0 : i32
    return %arg0, %c0_i32, %c0_i32_0 : i32, i32, i32
  }
  func.func @transform_1(%arg0: i32) -> (i32, i32) {
    %c0_i32 = arith.constant 0 : i32
    %c0_i32_0 = arith.constant 0 : i32
    %c0_i32_1 = arith.constant 0 : i32
    return %c0_i32, %c0_i32_0 : i32, i32
  }
  func.func @transform_2(%arg0: i32) -> (i32, i32, i32) {
    %c0_i32 = arith.constant 0 : i32
    %c0_i32_0 = arith.constant 0 : i32
    %c0_i32_1 = arith.constant 0 : i32
    return %arg0, %c0_i32, %c0_i32_0 : i32, i32, i32
  }
}

</mosaic_0001>

<bundles_post_ra>
// kernel: tpu_custom_call.1
= control target key start
LH: loop header
LB: loop body
LE: loop exit
PB: predicated region body
PF: predicated region fallthrough
CT: control target
= control target key end

     0   :  { %7 = vsyncpa [#allocation3], 0  ;;  %s1109_s0 = inlined_call_operand.hbm [shape: f32[2,4,18], index: 0, kind: input, shape index: {}]   ;;  %s1110_s1 = inlined_call_operand.hbm [shape: f32[56,128], index: 1, kind: input, shape index: {}]   ;;  %s1111_s2 = inlined_call_operand.hbm [shape: f32[2,4,128], index: 2, kind: output, shape index: {}]  }
   0x1   :  { %9 = vsyncpa [#allocation3 + $0x1], 0 }
   0x2   :  { %10 = vsyncpa [#allocation6], 0 }
   0x3   :  { %11 = vsyncpa [#allocation4], 0 }
   0x4   :  { %13 = vsyncpa [#allocation4 + $0x1], 0  ;;  %s899_s9 = smov 0   ;;  %s901_s10 = smov 0  }
   0x5   :  { %s903_s11 = smov 0   ;;  %s905_s12 = smov 0  }
   0x6 LB: > { %s920_s13 = sadd.s32 4294967295, %s874_s12   ;;  %s622_s14 = sadd.s32 4294967294, %s874_s12   ;;  %s874_s12 = sphi %s905_s12, %s1131_s12   ;;  %s870_s11 = sphi %s903_s11, %s1130_s11   ;;  %s866_s10 = sphi %s901_s10, %s1129_s10   ;;  %s862_s9 = sphi %s899_s9, %s1128_s9  }
   0x7   : > { %p39_p0 = scmp.ne.s32.totalorder %s866_s10, %s862_s9  ;;  %p1112_p1 = scmp.eq.s32.totalorder %s920_s13, 0 }
   0x8   : > { %p90_p3 = scmp.eq.s32.totalorder %s622_s14, 1  ;;  %p623_p5 = scmp.ge.s32.totalorder %s874_s12, 1 }
   0x9   : > { %p929_p4 = por %p1112_p1, %p39_p0  ;;  %p97_p7 = scmp.lt.s32.totalorder %s874_s12, 3 }
   0xa   : > { %p934_p6 = por %p90_p3, %p39_p0  ;;  %s876_s18 = smov [#allocation5]  }
   0xb   : > { %s1115_s15 = scalar_select %p929_p4, 1, 0 }
   0xc   : > { %s1116_s16 = scalar_select %p934_p6, 1, 0 }
   0xd   : > { %p939_p8 = pnand %p623_p5, %p97_p7  ;;  %s109_s19 = sshll.u32 %s876_s18, 4  ;;  %s943_s19 = int_to_ptr.vmem [resolvable:$true] %s109_s19 }
   0xe   : > { %s955_s21 = sadd.s32 1, %s874_s12   ;;  %s26_s22 = sadd.s32 1, %s870_s11 }
   0xf   : > { %s1117_s17 = scalar_select %p939_p8, 1, 0 }
  0x10   : > { %p692_p9 = pneg %p939_p8  ;;  %s23_s23 = ssub.s32 %s874_s12, %s955_s21 }
  0x11   : > { %s746_s26 = scalar_lea.hbm %s1110_s1, 896 }
  0x12   : > { %p950_p11 = pnand %p692_p9, %p1112_p1  ;;  %p747_p12 = scmp.ne.s32.totalorder %s1110_s1, %s746_s26 }
  0x13   : > { %p753_p5 = scmp.lt.u32.totalorder %s746_s26, %s1110_s1 }
  0x14   : > { %p748_p13 = pneg %p950_p11 }
  0x16   : > { %p749_p0 = pnand %p748_p13, %p747_p12 }
  0x18   : > { %p750_p3 = pneg %p749_p0 }
  0x1a   : > { %p755_p7 = pnand %p753_p5, %p750_p3 }
  0x1c   : > { %758 = shalt.err (!%p755_p7)
}
  0x1d   : > { %s759_s3 = scalar_lea.vmem %s943_s19, 896  ;;  %p767_p2 = scmp.lt.s32.totalorder %s943_s19, %s943_s19 }
  0x1e   : > { %p760_p9 = scmp.ne.s32.totalorder %s943_s19, %s759_s3  ;;  %p768_p6 = scmp.lt.s32.totalorder %s759_s3, %s759_s3 }
  0x20   : > { %p762_p10 = pnand %p760_p9, %p748_p13  ;;  %p769_p4 = por %p768_p6, %p767_p2 }
  0x22   : > { %p763_p1 = pneg %p762_p10 }
  0x24   : > { %p770_p8 = pnand %p769_p4, %p763_p1 }
  0x26   : > { %773 = shalt.err (!%p770_p8)
}
  0x27   : > { %s877_s4 = smov 128   ;;  %s878_s5 = smov 8  }
  0x28   : > { %695 = dma.hbm_to_vmem [thread:$0]  (!%p950_p11), %s1110_s1, 896, %s943_s19, [#allocation6], %s877_s4, %s877_s4, %s878_s5  }
  0x29   : > { %p24_p2 = scmp.eq.s32.totalorder %s23_s23, 0  ;;  %p33_p1 = scmp.ne.s32.totalorder %s870_s11, %s866_s10 }
  0x2a   : > { %p34_p4 = scmp.eq.s32.totalorder %s874_s12, 0  ;;  %p705_p6 = scmp.lt.s32.totalorder %s874_s12, 2 }
  0x2b   : > { %s986_s8 = scalar_select %p24_p2, %s870_s11, %s26_s22  }
  0x2c   : > { %p35_p8 = por %p34_p4, %p33_p1  ;;  %p1119_p10 = scmp.eq.s32.totalorder %s920_s13, 1 }
  0x2d   : > { %s123_s18 = sand.u32 1, %s870_s11   ;;  %s627_s24 = sshll.u32 %s874_s12, 6 }
  0x2e   : > { %p990_p12 = por %p1119_p10, %p33_p1  ;;  %s626_s25 = sshll.u32 %s123_s18, 2 }
  0x2f   : > { %s999_s27 = scalar_lea.hbm %s1109_s0, %s627_s24  ;;  %s127_s19 = scalar_lea.vmem [#allocation2], %s626_s25 }
  0x30   : > { %s134_s22 = sshll.u32 %s127_s19, 4  ;;  %p1001_p11 = pnand %p705_p6, %p35_p8  ;;  %s1005_s22 = int_to_ptr.vmem [resolvable:$true] %s134_s22 }
  0x31   : > { %s124_s28 = scalar_lea.sflag [#allocation3], %s123_s18  ;;  %s774_s29 = scalar_lea.hbm %s999_s27, 64 }
  0x32   : > { %p775_p13 = scmp.ne.s32.totalorder %s999_s27, %s774_s29  ;;  %p776_p0 = pneg %p1001_p11 }
  0x33   : > { %s779_s4 = scalar_lea.hbm %s1109_s0, 128  ;;  %p780_p7 = scmp.lt.u32.totalorder %s999_s27, %s1109_s0 }
  0x34   : > { %p777_p3 = pnand %p776_p0, %p775_p13  ;;  %p781_p9 = scmp.lt.u32.totalorder %s779_s4, %s774_s29 }
  0x35   : > { %p783_p1 = scmp.lt.u32.totalorder %s774_s29, %s999_s27 }
  0x36   : > { %p778_p5 = pneg %p777_p3  ;;  %p782_p2 = por %p781_p9, %p780_p7 }
  0x38   : > { %p784_p4 = por %p783_p1, %p782_p2 }
  0x3a   : > { %p785_p6 = pnand %p784_p4, %p778_p5 }
  0x3c   : > { %788 = shalt.err (!%p785_p6)
}
  0x3d   : > { %s789_s7 = scalar_lea.vmem %s1005_s22, 64  ;;  %s879_s18 = smov [#allocation2]  }
  0x3e   : > { %p790_p8 = scmp.ne.s32.totalorder %s1005_s22, %s789_s7  ;;  %s794_s24 = sshll.u32 %s879_s18, 4  ;;  %s795_s24 = int_to_ptr.vmem [resolvable:$false] %s794_s24 }
  0x3f   : > { %s796_s25 = scalar_lea.vmem %s795_s24, 128  ;;  %p797_p3 = scmp.lt.s32.totalorder %s1005_s22, %s795_s24 }
  0x40   : > { %p792_p10 = pnand %p790_p8, %p776_p0  ;;  %p798_p7 = scmp.lt.s32.totalorder %s796_s25, %s789_s7 }
  0x42   : > { %p793_p13 = pneg %p792_p10  ;;  %p799_p9 = por %p798_p7, %p797_p3 }
  0x44   : > { %p800_p2 = pnand %p799_p9, %p793_p13 }
  0x46   : > { %803 = shalt.err (!%p800_p2)
}
  0x47   : > { %699 = dma.hbm_to_vmem [thread:$0]  (!%p1001_p11), %s999_s27, 64, %s1005_s22, %s124_s28  }
  0x48   : > { %p1122_p5 = scmp.ne.s32.totalorder %s1117_s17, 0 }
  0x49   : > { %s1035_s20 = sand.u32 (!%p1122_p5), 1, %s866_s10   ;;  %p1123_p0 = scmp.ne.s32.totalorder (!%p1122_p5), %s1115_s15, 0 }
  0x4a   : > { %143 = sbr.rel (%p1122_p5) target bundleno = 996 (0x3e4), region = 28  ;;  %s629_s26 = sshll.u32 (!%p1122_p5), %s1035_s20, 2 }
  0x4b   : > { %s146_s19 = scalar_lea.sflag (!%p1122_p5), [#allocation3], %s1035_s20  ;;  %s149_s29 = scalar_lea.vmem (!%p1122_p5), [#allocation2], %s629_s26 }
  0x51   : > { %849 = dma.done.wait (%p1123_p0), %s146_s19, 64  }
  0x52   : > { %851 = vsyncadd (%p1123_p0), %s146_s19, 4294967232  ;;  %p1124_p11 = scmp.eq.s32.totalorder %s920_s13, 0 }
  0x54   : > { %853 = dma.done.wait (%p1124_p11), [#allocation6], 896   ;;  %p1125_p1 = pmov %p1124_p11 }
  0x55   : > { %v880_v0 = vmov 0.0|0.0   ;;  %vm881_vm0 = vmmov 0   ;;  %v882_v1 = vmov 0.0   ;;  %v175_v2 = vld [vmem:[#allocation5] sm:$0xff]  ;;  %v176_v3 = vld [vmem:[#allocation5 + $0x8] sm:$0xff]  ;;  %vm193_vm1 = vcmask 1041408  }
  0x56   : > { %855 = vsyncadd (%p1125_p1), [#allocation6], 4294966400  ;;  %681 = vmatprep.subr.bf16.mxu0 %v880_v0  ;;  %663 = vmatprep.mubr.msk.f32.mxu0 %vm881_vm0, %v882_v1  ;;  %v682_v4 = vpack.c.bf16 %v176_v3, %v175_v2  ;;  %v177_v5 = vld [vmem:[#allocation5 + $0x10] sm:$0x3]  ;;  %v174_v6 = vld [vmem:[%s149_s29] sm:$0xf]  ;;  %v441_v29 = vlaneseq }
  0x57   : > { %666 = vmatprep.subr.mxu1 %v882_v1  ;;  %668 = vmatprep.mubr.msk.f32.mxu1 %vm881_vm0, %v882_v1  ;;  %vm189_vm2 = vcmask 146432   ;;  %v179_v7 = vld [vmem:[#allocation5 + $0x18] sm:$0xf]  ;;  %vm276_vm3 = vcmask 1043456   ;;  %v632_v8 = vld [vmem:[#allocation5 + $0x30] ss:$0 sm:$0xff] }
  0x58   : > { %683 = vmatpush3.bf16.msra.mxu0 %v682_v4  ;;  %667 = vmatpush3.msk.msra.mxu1 %vm276_vm3, %v179_v7  ;;  %vm272_vm4 = vcmask 31744   ;;  %v181_v13 = vld [vmem:[#allocation5 + $0x20] sm:$0xf]  ;;  %v635_v14 = vld [vmem:[#allocation5 + $0x31] ss:$0 sm:$0xff]  ;;  %vm351_vm5 = vcmask 27648  }
  0x59   : > { %661 = vmatprep.subr.mxu0 %v882_v1  ;;  %671 = vmatprep.subr.mxu1 %v882_v1  ;;  %v183_v27 = vld [vmem:[#allocation5 + $0x28] sm:$0xf]  ;;  %v182_v28 = vld [vmem:[#allocation5 + $0x32] sm:$0x1]  ;;  %v442_v34 = vshrl.u32 %v441_v29, 7  ;;  %s644_s15 = sshll.u32 %s920_s13, 6 }
  0x5a   : > { %v640_v41 = vld [vmem:[#allocation5 + $0x33] ss:$0 sm:$0xff]  ;;  %s173_s17 = scalar_lea.vmem [#allocation7], %s629_s26  ;;  %s1065_s28 = scalar_lea.hbm %s1111_s2, %s644_s15 }
  0x5b   : > { %v443_v37 = vsub.s32 0, %v442_v34  ;;  %s542_s27 = sshll.u32 %s173_s17, 4  ;;  %s529_s30 = scalar_lea.sflag [#allocation4], %s1035_s20  ;;  %s1067_s27 = int_to_ptr.vmem [resolvable:$true] %s542_s27 }
  0x5c   : > { %662 = vmatpush3.msk.msra.mxu0 %vm193_vm1, %v177_v5  ;;  %s804_s3 = scalar_lea.vmem %s1067_s27, 64  ;;  %s883_s13 = smov [#allocation7]  }
  0x5d   : > { %664 = vmatmul.mubr.msk.f32.vlgmr.msra.gmra.mrb[0].mxu0 %vm189_vm2, %v174_v6  ;;  %676 = vmatprep.subr.mxu0 %v882_v1  ;;  %p805_p4 = scmp.ne.s32.totalorder %s1067_s27, %s804_s3  ;;  %s808_s4 = sshll.u32 %s883_s13, 4  ;;  %s809_s4 = int_to_ptr.vmem [resolvable:$false] %s808_s4 }
  0x5e   : > { %678 = vmatprep.mubr.msk.f32.mxu0 %vm881_vm0, %v882_v1  ;;  %677 = vmatpush3.msk.msra.mxu0 %vm276_vm3, %v183_v27  ;;  %s810_s5 = scalar_lea.vmem %s809_s4, 128  ;;  %p811_p10 = scmp.lt.s32.totalorder %s1067_s27, %s809_s4 }
  0x5f   : > { %p806_p6 = pnand %p805_p4, %p990_p12  ;;  %p812_p13 = scmp.lt.s32.totalorder %s810_s5, %s804_s3 }
  0x61   : > { %p807_p8 = pneg %p806_p6  ;;  %p813_p3 = por %p812_p13, %p811_p10 }
  0x63   : > { %p814_p7 = pnand %p813_p3, %p807_p8 }
 0x130   : > { %v263_v9 = vpop.f32.mrb[0].mxu0 }
 0x131   : > { %v264_v10 = vadd.f32 %v632_v8, %v263_v9  ;;  %v665_v11 = vpop.f32.mrb[1].mxu0 }
 0x133   : > { %v267_v12 = vmax.f32 %v264_v10, 0.0 }
 0x135   : > { %669 = vmatmul.mubr.msk.f32.vlgmr.msra.gmra.mrb[0].mxu1 %vm272_vm4, %v267_v12 }
 0x136   : > { %673 = vmatprep.mubr.msk.f32.mxu1 %vm881_vm0, %v882_v1  ;;  %672 = vmatpush3.msk.msra.mxu1 %vm276_vm3, %v181_v13 }
 0x208   : > { %v346_v15 = vpop.f32.mrb[0].mxu1 }
 0x209   : > { %v347_v16 = vadd.f32 %v635_v14, %v346_v15  ;;  %v670_v17 = vpop.f32.mrb[1].mxu1 }
 0x20b   : > { %v350_v18 = vmax.f32 %v347_v16, 0.0 }
 0x20d   : > { %v352_v19 = vsel %vm351_vm5, %v350_v18, 0.0 }
 0x20e   : > { %v353_v20 = vrot.slane %v352_v19, 4 }
 0x210   : > { %v354_v21 = vadd.f32 %v353_v20, %v352_v19 }
 0x212   : > { %v355_v22 = vrot.slane %v354_v21, 2 }
 0x214   : > { %v356_v23 = vadd.f32 %v355_v22, %v354_v21 }
 0x216   : > { %v357_v24 = vrot.slane %v356_v23, 1 }
 0x218   : > { %v358_v25 = vadd.f32 %v357_v24, %v356_v23 }
 0x21a   : > { %v360_v26 = vmul.f32 0.25, %v358_v25 }
 0x21c   : > { %674 = vmatmul.mubr.msk.f32.vlgmr.msra.gmra.mrb[2].mxu1 %vm272_vm4, %v360_v26 }
 0x2ef   : > { %v433_v30 = vpop.f32.mrb[2].mxu1 }
 0x2f0   : > { %v434_v31 = vadd.f32 %v433_v30, %v182_v28  ;;  %v675_v32 = vpop.f32.mrb[3].mxu1 }
 0x2f2   : > { %v437_v33 = vmul.f32 0.16666667, %v434_v31 }
 0x2f4   : > { %v438_v35 = vadd.f32 0.5, %v437_v33 }
 0x2f6   : > { %v439_v36 = vmax.f32 %v438_v35, 0.0 }
 0x2f8   : > { %v440_v38 = vmin.f32 %v439_v36, 1.0 }
 0x2fa   : > { %v444_v39 = vrot.slane %v440_v38, %v443_v37 }
 0x2fc   : > { %v445_v40 = vmul.f32 %v444_v39, %v350_v18 }
 0x2fe   : > { %679 = vmatmul.mubr.msk.f32.vlgmr.msra.gmra.mrb[2].mxu0 %vm272_vm4, %v445_v40 }
 0x3d1   : > { %v522_v42 = vpop.f32.mrb[2].mxu0 }
 0x3d2   : > { %v523_v43 = vadd.f32 %v640_v41, %v522_v42  ;;  %v680_v44 = vpop.f32.mrb[3].mxu0 }
 0x3d4   : > { %v526_v45 = vmax.f32 %v523_v43, 0.0 }
 0x3d6   : > { %527 = vst [vmem:[%s173_s17] sm:$0xf] %v526_v45 }
 0x3d7   : > { %817 = shalt.err (!%p814_p7)
}
 0x3d8   : > { %s818_s6 = scalar_lea.hbm %s1065_s28, 64  ;;  %s822_s24 = scalar_lea.hbm %s1111_s2, 128 }
 0x3d9   : > { %p819_p9 = scmp.ne.s32.totalorder %s1065_s28, %s818_s6  ;;  %p823_p0 = scmp.lt.u32.totalorder %s1065_s28, %s1111_s2 }
 0x3da   : > { %p824_p11 = scmp.lt.u32.totalorder %s822_s24, %s818_s6  ;;  %p826_p4 = scmp.lt.u32.totalorder %s818_s6, %s1065_s28 }
 0x3db   : > { %p820_p2 = pnand %p819_p9, %p990_p12 }
 0x3dc   : > { %p825_p1 = por %p824_p11, %p823_p0 }
 0x3dd   : > { %p821_p5 = pneg %p820_p2 }
 0x3de   : > { %p827_p6 = por %p826_p4, %p825_p1 }
 0x3e0   : > { %p828_p8 = pnand %p827_p6, %p821_p5 }
 0x3e2   : > { %831 = shalt.err (!%p828_p8)
}
 0x3e3   : > { %690 = dma.vmem_to_hbm [thread:$0]  (%p990_p12), %s1067_s27, 64, %s1065_s28, %s529_s30  }
 0x3e4 PF: > { %s554_s26 = sand.u32 1, %s862_s9   ;;  %p1126_p10 = scmp.ne.s32.totalorder %s1116_s16, 0 }
 0x3e5   : > { %p1127_p13 = scmp.ge.s32.totalorder %s874_s12, 2  ;;  %s555_s19 = scalar_lea.sflag [#allocation4], %s554_s26 }
 0x3e7   : > { %p701_p3 = pnand %p1127_p13, %p1126_p10 }
 0x3e9   : > { %857 = dma.done.wait (!%p701_p3), %s555_s19, 64  }
 0x3ea   : > { %859 = vsyncadd (!%p701_p3), %s555_s19, 4294967232  ;;  %p16_p7 = scmp.ge.s32.totalorder %s955_s21, 4   ;;  %s1128_s9 = smov %s866_s10 }
 0x3eb   : > { %s1129_s10 = smov %s870_s11  ;;  %s1130_s11 = smov %s986_s8 }
 0x3ec   : > { %s1131_s12 = smov %s955_s21  ;;  %18 = sbr.rel (!%p16_p7) target bundleno = 6 (0x6), region = 77 }
 0x3f3   :  { %560 = vsyncpa [#allocation3], 1 }
 0x3f4   :  { %562 = vsyncpa [#allocation3 + $0x1], 1 }
 0x3f5   :  { %563 = vsyncpa [#allocation6], 1 }
 0x3f6   :  { %564 = vsyncpa [#allocation4], 1 }
 0x3f7   :  { %566 = vsyncpa [#allocation4 + $0x1], 1 }

</bundles_post_ra>
